<compile_context>
chip_gen: v5e
topology: v5e:2x2
jax: 0.10.0
libtpu: 0.0.40
codegen_flags: <defaults>
</compile_context>

<pallas_src>
import math

import jax
import jax.numpy as jnp
from jax.experimental import pallas as pl
from jax.experimental.pallas import tpu as pltpu

EPSILON = 1e-12          # module default: epsilon or 1e-12
_MAX_TILE_ROWS = 2048    # ~86% of HBM roofline already at 1024-row tiles


def _vmem_config():
    """(tile_vmem_budget_bytes, vmem_limit_bytes), generation-aware."""
    phys = None
    try:
        info = pltpu.get_tpu_info()
        phys = getattr(info, "vmem_capacity_bytes", None)
    except Exception:  # pragma: no cover - e.g. CPU interpret mode
        phys = None
    if phys is None:
        return 16 * 2**20, 32 * 2**20          # safe on every generation
    if phys >= 96 * 2**20:                      # v5e / v6e: 128 MiB physical
        return 48 * 2**20, 96 * 2**20
    return 20 * 2**20, 48 * 2**20               # v7x-class: 64 MiB physical


def _choose_tile_rows(n_rows, width, itemsize, vmem_budget):
    """Largest row tile that fits the VMEM budget, >=2 grid steps if possible."""
    # Sublane packing multiple: 8 for 32-bit, 16 for 16-bit, 32 for 8-bit.
    mult = max(8, 32 // max(itemsize, 1))
    if n_rows <= mult:
        # Whole array in one block (block == array: always a legal BlockSpec).
        return max(int(n_rows), 1)
    # Per-row VMEM: double-buffered input + output (2*2*itemsize per element)
    # plus ~4 live f32 intermediates (x_f32, xc, broadcast mean/inv, y)
    # => ~16 B per element.  Budget is kept at <= half of vmem_limit.
    bytes_per_row = width * (4 * itemsize + 16)
    max_rows = max(mult, vmem_budget // bytes_per_row)
    tile = min(max_rows, _MAX_TILE_ROWS)
    tile = max(mult, (tile // mult) * mult)
    n_ceil = ((n_rows + mult - 1) // mult) * mult
    tile = min(tile, n_ceil)
    # Keep the grid at >= 2 steps so both v7x TensorCores get work.
    if n_ceil >= 2 * mult:
        half = (((n_ceil + 1) // 2) + mult - 1) // mult * mult
        tile = min(tile, half)
    return int(tile)


def _make_layernorm_kernel(g, d):
    """Kernel for rows that hold g logical LayerNorm rows of width d each."""
    gd = g * d
    inv_d = 1.0 / float(d)

    def kernel(x_ref, gamma_ref, beta_ref, o_ref):
        x = x_ref[...].astype(jnp.float32)       # (tile, g*d)
        gamma = gamma_ref[...]                   # (1, g*d) f32, pre-tiled
        beta = beta_ref[...]

        if g == 1:
            # Plain per-row path (D already lane-dense enough / fold disabled).
            mean = jnp.mean(x, axis=-1, keepdims=True)
            xc = x - mean
            var = jnp.mean(xc * xc, axis=-1, keepdims=True)
            s = var + EPSILON
            # Exact divide on the VALU.  (pl.reciprocal(approx=True) would use
            # the EUP but has ~1e-3 rel error; irrelevant here, HBM-bound.)
            inv = 1.0 / (s * s)                  # module quirk: (var+eps)^2
            y = xc * inv * gamma + beta
        else:
            # g logical rows folded into one lane-dense super-row.  Per-sub-row
            # reductions via a block-diagonal 0/1 matrix on the idle MXU;
            # broadcast back with its transpose.  precision=HIGHEST keeps the
            # f32 contraction at f32 accuracy (no bf16 truncation).
            row = jax.lax.broadcasted_iota(jnp.int32, (gd, g), 0)
            col = jax.lax.broadcasted_iota(jnp.int32, (gd, g), 1)
            lo = col * d
            m = jnp.where((row >= lo) & (row < lo + d), 1.0, 0.0)       # (gd, g)
            row_t = jax.lax.broadcasted_iota(jnp.int32, (g, gd), 0)
            col_t = jax.lax.broadcasted_iota(jnp.int32, (g, gd), 1)
            lo_t = row_t * d
            m_t = jnp.where((col_t >= lo_t) & (col_t < lo_t + d), 1.0, 0.0)  # (g, gd)

            hi = jax.lax.Precision.HIGHEST
            sums = jnp.dot(x, m, preferred_element_type=jnp.float32,
                           precision=hi)                                # (tile, g)
            mean = sums * inv_d
            mean_b = jnp.dot(mean, m_t, preferred_element_type=jnp.float32,
                             precision=hi)                              # (tile, gd)
            xc = x - mean_b
            sq = jnp.dot(xc * xc, m, preferred_element_type=jnp.float32,
                         precision=hi)
            var = sq * inv_d
            s = var + EPSILON
            inv = 1.0 / (s * s)                  # module quirk: (var+eps)^2
            inv_b = jnp.dot(inv, m_t, preferred_element_type=jnp.float32,
                            precision=hi)
            y = xc * inv_b * gamma + beta

        o_ref[...] = y.astype(o_ref.dtype)

    return kernel


def layer_norm_pallas(x, gamma, beta):
    """x: (..., D); gamma, beta: (D,). Returns same shape/dtype as x."""
    orig_shape = x.shape
    d = orig_shape[-1]
    x2 = x.reshape(-1, d)
    n = x2.shape[0]
    if n == 0:
        return x
    itemsize = jnp.dtype(x.dtype).itemsize

    # Lane-density fold for small D: pack g rows into one (g*D)-wide super-row
    # (multiple of 128 lanes) so output stores are wide and unmasked.  The
    # reshape is free (row-major contiguous).  Only applied when N % g == 0 so
    # no wrapper-side padding (= extra HBM passes) is ever needed.
    g = 1
    if 0 < d < 128:
        g_cand = 128 // math.gcd(d, 128)       # smallest g with (g*d) % 128 == 0
        if g_cand > 1 and n % g_cand == 0 and g_cand * d <= 1024:
            g = g_cand
    width = g * d
    n_rows = n // g
    xr = x2 if g == 1 else x2.reshape(n_rows, width)

    # Pre-cast (and, if folded, tile) the tiny params once in the wrapper.
    gamma_f = jnp.tile(gamma.astype(jnp.float32).reshape(-1), g).reshape(1, width)
    beta_f = jnp.tile(beta.astype(jnp.float32).reshape(-1), g).reshape(1, width)

    vmem_budget, vmem_limit = _vmem_config()
    tile_rows = _choose_tile_rows(n_rows, width, itemsize, vmem_budget)
    n_tiles = pl.cdiv(n_rows, tile_rows)

    # No padding: the ragged last tile's out-of-bounds reads only feed rows
    # whose writes Pallas drops (LayerNorm is strictly per-row; keep it so).
    out = pl.pallas_call(
        _make_layernorm_kernel(g, d),
        out_shape=jax.ShapeDtypeStruct((n_rows, width), x.dtype),
        grid_spec=pltpu.PrefetchScalarGridSpec(
            num_scalar_prefetch=0,
            grid=(n_tiles,),
            in_specs=[
                pl.BlockSpec((tile_rows, width), lambda i: (i, 0)),
                pl.BlockSpec((1, width), lambda i: (0, 0)),
                pl.BlockSpec((1, width), lambda i: (0, 0)),
            ],
            out_specs=pl.BlockSpec((tile_rows, width), lambda i: (i, 0)),
        ),
        compiler_params=pltpu.CompilerParams(
            dimension_semantics=("parallel",),
            vmem_limit_bytes=vmem_limit,
        ),
    )(xr, gamma_f, beta_f)

    return out.reshape(orig_shape)


# TODO(synk): conditional=True branch (beta_dense/gamma_dense applied to `cond`)
# is not implemented in-kernel; with the module's zero-init of those dense
# layers it is numerically identical to the non-conditional path anyway.


def _reference(x, gamma, beta):
    xf = x.astype(jnp.float32)
    mean = jnp.mean(xf, axis=-1, keepdims=True)
    xc = xf - mean
    var = jnp.mean(xc * xc, axis=-1, keepdims=True)
    std = (var + EPSILON) ** 2          # module quirk: squared, not sqrt
    return ((xc / std) * gamma.astype(jnp.float32)
            + beta.astype(jnp.float32)).astype(x.dtype)


if __name__ == "__main__":
    key = jax.random.PRNGKey(0)
    B, S, D = 2, 8, 32  # batch, seq, hidden (input_dim = 32)

    x = jax.random.normal(key, (B, S, D), dtype=jnp.float32)

    # Deterministic parameter init, matching the module's __init__:
    gamma = jnp.ones((D,), dtype=jnp.float32)   # self.gamma = ones(input_dim)
    beta = jnp.zeros((D,), dtype=jnp.float32)   # self.beta  = zeros(input_dim)

    # Folded (lane-dense) path: N = 16 divisible by g = 4.
    out = jax.block_until_ready(layer_norm_pallas(x, gamma, beta))
    ref = _reference(x, gamma, beta)
    assert out.shape == x.shape and out.dtype == x.dtype
    assert jnp.allclose(out, ref, rtol=1e-5, atol=1e-5), "mismatch vs reference"

    # Plain path with a ragged last tile (N = 21 not divisible by g): exercises
    # the no-pad / dropped-write handling.
    x_odd = jax.random.normal(jax.random.PRNGKey(1), (3, 7, D), dtype=jnp.float32)
    out_odd = jax.block_until_ready(layer_norm_pallas(x_odd, gamma, beta))
    assert jnp.allclose(out_odd, _reference(x_odd, gamma, beta),
                        rtol=1e-5, atol=1e-5), "mismatch vs reference (odd N)"

    print("KERNEL_OK")
</pallas_src>

<mosaic_0001>
module attributes {stable_mosaic.version = 11 : i64} {
  func.func @kernel(%arg0: i32, %arg1: memref<4x128xf32, #tpu.memory_space<vmem>>, %arg2: memref<1x128xf32, #tpu.memory_space<vmem>>, %arg3: memref<1x128xf32, #tpu.memory_space<vmem>>, %arg4: memref<4x128xf32, #tpu.memory_space<vmem>>) attributes {dimension_semantics = [#tpu.dimension_semantics<parallel>], iteration_bounds = array<i64: 1>, scalar_prefetch = 0 : i64, scratch_operands = 0 : i64, tpu.core_type = #tpu.core_type<tc>, window_params = [{transform_indices = @transform_0, window_bounds = array<i64: 4, 128>}, {pipeline_mode = #tpu.pipeline_mode<synchronous>, transform_indices = @transform_1, window_bounds = array<i64: 1, 128>}, {pipeline_mode = #tpu.pipeline_mode<synchronous>, transform_indices = @transform_2, window_bounds = array<i64: 1, 128>}, {transform_indices = @transform_3, window_bounds = array<i64: 4, 128>}]} {
    %c0 = arith.constant 0 : index
    %c0_0 = arith.constant 0 : index
    %0 = vector.load %arg1[%c0, %c0_0] : memref<4x128xf32, #tpu.memory_space<vmem>>, vector<4x128xf32>
    %c0_1 = arith.constant 0 : index
    %c0_2 = arith.constant 0 : index
    %1 = vector.load %arg2[%c0_1, %c0_2] : memref<1x128xf32, #tpu.memory_space<vmem>>, vector<1x128xf32>
    %c0_3 = arith.constant 0 : index
    %c0_4 = arith.constant 0 : index
    %2 = vector.load %arg3[%c0_3, %c0_4] : memref<1x128xf32, #tpu.memory_space<vmem>>, vector<1x128xf32>
    %3 = tpu.iota {dimensions = array<i32: 0>} : vector<128x4xi32>
    %4 = tpu.iota {dimensions = array<i32: 1>} : vector<128x4xi32>
    %c32_i32 = arith.constant 32 : i32
    %5 = vector.broadcast %c32_i32 : i32 to vector<128x4xi32>
    %6 = arith.muli %4, %5 : vector<128x4xi32>
    %7 = arith.cmpi sge, %3, %6 : vector<128x4xi32>
    %c32_i32_5 = arith.constant 32 : i32
    %8 = vector.broadcast %c32_i32_5 : i32 to vector<128x4xi32>
    %9 = arith.addi %6, %8 : vector<128x4xi32>
    %10 = arith.cmpi slt, %3, %9 : vector<128x4xi32>
    %11 = arith.andi %7, %10 : vector<128x4xi1>
    %cst = arith.constant 1.000000e+00 : f32
    %cst_6 = arith.constant 0.000000e+00 : f32
    %12 = vector.broadcast %cst : f32 to vector<128x4xf32>
    %13 = vector.broadcast %cst_6 : f32 to vector<128x4xf32>
    %14 = arith.select %11, %12, %13 : vector<128x4xi1>, vector<128x4xf32>
    %15 = tpu.iota {dimensions = array<i32: 0>} : vector<4x128xi32>
    %16 = tpu.iota {dimensions = array<i32: 1>} : vector<4x128xi32>
    %c32_i32_7 = arith.constant 32 : i32
    %17 = vector.broadcast %c32_i32_7 : i32 to vector<4x128xi32>
    %18 = arith.muli %15, %17 : vector<4x128xi32>
    %19 = arith.cmpi sge, %16, %18 : vector<4x128xi32>
    %c32_i32_8 = arith.constant 32 : i32
    %20 = vector.broadcast %c32_i32_8 : i32 to vector<4x128xi32>
    %21 = arith.addi %18, %20 : vector<4x128xi32>
    %22 = arith.cmpi slt, %16, %21 : vector<4x128xi32>
    %23 = arith.andi %19, %22 : vector<4x128xi1>
    %cst_9 = arith.constant 1.000000e+00 : f32
    %cst_10 = arith.constant 0.000000e+00 : f32
    %24 = vector.broadcast %cst_9 : f32 to vector<4x128xf32>
    %25 = vector.broadcast %cst_10 : f32 to vector<4x128xf32>
    %26 = arith.select %23, %24, %25 : vector<4x128xi1>, vector<4x128xf32>
    %cst_11 = arith.constant dense<0.000000e+00> : vector<4x4xf32>
    %27 = tpu.matmul %0, %14, %cst_11 {dimension_numbers = #tpu.dot_dimension_numbers<[1], [0], [0], [1], [0, 0, 1, 1], [], []>, precision = #tpu.contract_precision<fp32>} : vector<4x128xf32>, vector<128x4xf32>, vector<4x4xf32> -> vector<4x4xf32>
    %cst_12 = arith.constant 3.125000e-02 : f32
    %28 = vector.broadcast %cst_12 : f32 to vector<4x4xf32>
    %29 = arith.mulf %27, %28 : vector<4x4xf32>
    %cst_13 = arith.constant dense<0.000000e+00> : vector<4x128xf32>
    %30 = tpu.matmul %29, %26, %cst_13 {dimension_numbers = #tpu.dot_dimension_numbers<[1], [0], [0], [1], [0, 0, 1, 1], [], []>, precision = #tpu.contract_precision<fp32>} : vector<4x4xf32>, vector<4x128xf32>, vector<4x128xf32> -> vector<4x128xf32>
    %31 = arith.subf %0, %30 : vector<4x128xf32>
    %32 = arith.mulf %31, %31 : vector<4x128xf32>
    %cst_14 = arith.constant dense<0.000000e+00> : vector<4x4xf32>
    %33 = tpu.matmul %32, %14, %cst_14 {dimension_numbers = #tpu.dot_dimension_numbers<[1], [0], [0], [1], [0, 0, 1, 1], [], []>, precision = #tpu.contract_precision<fp32>} : vector<4x128xf32>, vector<128x4xf32>, vector<4x4xf32> -> vector<4x4xf32>
    %cst_15 = arith.constant 3.125000e-02 : f32
    %34 = vector.broadcast %cst_15 : f32 to vector<4x4xf32>
    %35 = arith.mulf %33, %34 : vector<4x4xf32>
    %cst_16 = arith.constant 9.99999996E-13 : f32
    %36 = vector.broadcast %cst_16 : f32 to vector<4x4xf32>
    %37 = arith.addf %35, %36 : vector<4x4xf32>
    %38 = arith.mulf %37, %37 : vector<4x4xf32>
    %cst_17 = arith.constant 1.000000e+00 : f32
    %39 = vector.broadcast %cst_17 : f32 to vector<4x4xf32>
    %40 = arith.divf %39, %38 : vector<4x4xf32>
    %cst_18 = arith.constant dense<0.000000e+00> : vector<4x128xf32>
    %41 = tpu.matmul %40, %26, %cst_18 {dimension_numbers = #tpu.dot_dimension_numbers<[1], [0], [0], [1], [0, 0, 1, 1], [], []>, precision = #tpu.contract_precision<fp32>} : vector<4x4xf32>, vector<4x128xf32>, vector<4x128xf32> -> vector<4x128xf32>
    %42 = arith.mulf %31, %41 : vector<4x128xf32>
    %43 = vector.broadcast %1 : vector<1x128xf32> to vector<4x128xf32>
    %44 = arith.mulf %42, %43 : vector<4x128xf32>
    %45 = vector.broadcast %2 : vector<1x128xf32> to vector<4x128xf32>
    %46 = arith.addf %44, %45 : vector<4x128xf32>
    %c0_19 = arith.constant 0 : index
    %c0_20 = arith.constant 0 : index
    %47 = vector.load %arg4[%c0_19, %c0_20] : memref<4x128xf32, #tpu.memory_space<vmem>>, vector<4x128xf32>
    tpu.vector_store %arg4[%c0_19, %c0_20], %46 {strides = array<i32>} : memref<4x128xf32, #tpu.memory_space<vmem>>, vector<4x128xf32>,
    return
  }
  func.func @transform_0(%arg0: i32) -> (i32, i32) {
    %c0_i32 = arith.constant 0 : i32
    %c0_i32_0 = arith.constant 0 : i32
    return %arg0, %c0_i32 : i32, i32
  }
  func.func @transform_1(%arg0: i32) -> (i32, i32) {
    %c0_i32 = arith.constant 0 : i32
    %c0_i32_0 = arith.constant 0 : i32
    %c0_i32_1 = arith.constant 0 : i32
    return %c0_i32, %c0_i32_0 : i32, i32
  }
  func.func @transform_2(%arg0: i32) -> (i32, i32) {
    %c0_i32 = arith.constant 0 : i32
    %c0_i32_0 = arith.constant 0 : i32
    %c0_i32_1 = arith.constant 0 : i32
    return %c0_i32, %c0_i32_0 : i32, i32
  }
  func.func @transform_3(%arg0: i32) -> (i32, i32) {
    %c0_i32 = arith.constant 0 : i32
    %c0_i32_0 = arith.constant 0 : i32
    return %arg0, %c0_i32 : i32, i32
  }
}

</mosaic_0001>

<bundles_post_ra>
// kernel: tpu_custom_call.1
= control target key start
LH: loop header
LB: loop body
LE: loop exit
PB: predicated region body
PF: predicated region fallthrough
CT: control target
= control target key end

     0   :  { %8 = vsyncpa [#allocation3], 0  ;;  %s1991_s0 = inlined_call_operand.hbm [shape: f32[4,128], index: 0, kind: input, shape index: {}]   ;;  %s1992_s1 = inlined_call_operand.hbm [shape: f32[1,128], index: 1, kind: input, shape index: {}]   ;;  %s1993_s2 = inlined_call_operand.vmem [shape: f32[1,128], index: 2, kind: input, shape index: {}]   ;;  %s1994_s3 = inlined_call_operand.hbm [shape: f32[4,128], index: 3, kind: output, shape index: {}]  }
   0x1   :  { %9 = vsyncpa [#allocation6], 0 }
   0x2   :  { %10 = vsyncpa [#allocation4], 0  ;;  %s16_s14 = sshll.u32 %s1991_s0, 4  ;;  %s1168_s15 = smov [#allocation2]   ;;  %s17_s14 = int_to_ptr.hbm [resolvable:$true] %s16_s14 }
   0x3   :  { %s18_s16 = sshll.u32 %s1168_s15, 4  ;;  %s27_s19 = sshll.u32 %s1992_s1, 4  ;;  %s19_s16 = int_to_ptr.vmem [resolvable:$true] %s18_s16  ;;  %s28_s19 = int_to_ptr.hbm [resolvable:$true] %s27_s19 }
   0x4   :  { %21 = dma.hbm_to_vmem [thread:$0]  %s17_s14, 64, %s19_s16, [#allocation3]  }
   0x5   :  { %s1169_s20 = smov [#allocation5]  }
   0x6   :  { %s29_s21 = sshll.u32 %s1169_s20, 4  ;;  %s30_s21 = int_to_ptr.vmem [resolvable:$true] %s29_s21 }
   0x7   :  { %32 = dma.hbm_to_vmem [thread:$0]  %s28_s19, 16, %s30_s21, [#allocation6]  }
   0x8   :  { %1162 = dma.done.wait [#allocation3], 64  }
   0x9   :  { %1163 = vsyncadd [#allocation3], 4294967232  ;;  %v46_v0 = vlaneseq }
   0xa   :  { %1164 = dma.done.wait [#allocation6], 16  }
   0xb   :  { %1165 = vsyncadd [#allocation6], 4294967280  ;;  %v1199_v1 = vshrl.u32 %v46_v0, 7  ;;  %v1201_v2 = vand.u32 127, %v46_v0  ;;  %v1170_v14 = vmov 1.0   ;;  %v2003_v16 = vmov 0.0  }
   0xc   :  { %v2039_v37 = vmov 0  ;;  %v2041_v42 = vmov 0  ;;  %v2045_v52 = vmov 0  ;;  %v2048_v57 = vmov 0  ;;  %s1172_s22 = smov [#allocation7]   ;;  %s968_s26 = sshll.u32 %s1994_s3, 4  ;;  %s969_s26 = int_to_ptr.hbm [resolvable:$true] %s968_s26 }
   0xd   :  { %v62_v3 = vadd.s32 120, %v1199_v1  ;;  %v1205_v4 = vmul.u32 32, %v1201_v2  ;;  %v61_v5 = vadd.s32 112, %v1199_v1  ;;  %v60_v6 = vadd.s32 104, %v1199_v1  ;;  %s966_s23 = sshll.u32 %s1172_s22, 4  ;;  %s967_s23 = int_to_ptr.vmem [resolvable:$true] %s966_s23 }
   0xe   :  { %v59_v7 = vadd.s32 96, %v1199_v1  ;;  %v58_v8 = vadd.s32 88, %v1199_v1  ;;  %v57_v9 = vadd.s32 80, %v1199_v1  ;;  %v56_v10 = vadd.s32 72, %v1199_v1 }
   0xf   :  { %vm81_vm0 = vcmp.ge.s32.totalorder %v62_v3, %v1205_v4  ;;  %v1215_v11 = vadd.s32 32, %v1205_v4  ;;  %vm80_vm1 = vcmp.ge.s32.totalorder %v61_v5, %v1205_v4  ;;  %vm79_vm2 = vcmp.ge.s32.totalorder %v60_v6, %v1205_v4 }
  0x10   :  { %vm78_vm3 = vcmp.ge.s32.totalorder %v59_v7, %v1205_v4  ;;  %vm77_vm4 = vcmp.ge.s32.totalorder %v58_v8, %v1205_v4  ;;  %vm76_vm5 = vcmp.ge.s32.totalorder %v57_v9, %v1205_v4  ;;  %vm75_vm6 = vcmp.ge.s32.totalorder %v56_v10, %v1205_v4 }
  0x11   :  { %vm98_vm7 = vcmp.lt.s32.totalorder %v62_v3, %v1215_v11  ;;  %vm97_vm8 = vcmp.lt.s32.totalorder %v61_v5, %v1215_v11  ;;  %vm96_vm9 = vcmp.lt.s32.totalorder %v60_v6, %v1215_v11  ;;  %vm95_vm10 = vcmp.lt.s32.totalorder %v59_v7, %v1215_v11 }
  0x12   :  { %vm1227_vm11 = vmand %vm81_vm0, %vm98_vm7  ;;  %vm94_vm12 = vcmp.lt.s32.totalorder %v58_v8, %v1215_v11  ;;  %vm93_vm13 = vcmp.lt.s32.totalorder %v57_v9, %v1215_v11  ;;  %vm92_vm14 = vcmp.lt.s32.totalorder %v56_v10, %v1215_v11  ;;  %v55_v13 = vadd.s32 64, %v1199_v1 }
  0x13   :  { %979 = vmatpush.msk.msra.mxu0 %vm1227_vm11, %v1170_v14  ;;  %vm1240_vm15 = vmand %vm80_vm1, %vm97_vm8  ;;  %v130_v17 = vsel %vm1227_vm11, 1.0, %v2003_v16  ;;  %v54_v18 = vadd.s32 56, %v1199_v1  ;;  %v53_v19 = vadd.s32 48, %v1199_v1  ;;  %v1250_v20 = vadd.s32 40, %v1199_v1  ;;  %995 = vmatpush.msk.msra.mxu3 %vm1227_vm11, %v1170_v14 }
  0x14   :  { %vm1259_vm0 = vmand %vm79_vm2, %vm96_vm9  ;;  %v1263_v22 = vsub.f32 %v130_v17, %v130_v17  ;;  %v129_v23 = vsel %vm1240_vm15, 1.0, %v2003_v16  ;;  %vm74_vm1 = vcmp.ge.s32.totalorder %v55_v13, %v1205_v4  ;;  %vm91_vm7 = vcmp.lt.s32.totalorder %v55_v13, %v1215_v11 }
  0x15   :  { %980 = vmatpush.msk.msra.mxu0 %vm1240_vm15, %v1170_v14  ;;  %vm1277_vm2 = vmand %vm78_vm3, %vm95_vm10  ;;  %v1281_v25 = vsub.f32 %v129_v23, %v129_v23  ;;  %v128_v26 = vsel %vm1259_vm0, 1.0, %v2003_v16  ;;  %vm73_vm8 = vcmp.ge.s32.totalorder %v54_v18, %v1205_v4  ;;  %vm90_vm9 = vcmp.lt.s32.totalorder %v54_v18, %v1215_v11  ;;  %996 = vmatpush.msk.msra.mxu3 %vm1240_vm15, %v1170_v14 }
  0x16   :  { %v1292_v27 = vand.u32 4294901760, %v1263_v22  ;;  %vm1298_vm3 = vmand %vm77_vm4, %vm94_vm12  ;;  %v1302_v29 = vsub.f32 %v128_v26, %v128_v26  ;;  %v127_v30 = vsel %vm1277_vm2, 1.0, %v2003_v16  ;;  %vm72_vm10 = vcmp.ge.s32.totalorder %v53_v19, %v1205_v4  ;;  %248 = vmatpush.msra.mxu2 %v1263_v22 }
  0x17   :  { %981 = vmatpush.msk.msra.mxu0 %vm1259_vm0, %v1170_v14  ;;  %v1313_v31 = vand.u32 4294901760, %v1281_v25  ;;  %vm1319_vm4 = vmand %vm76_vm5, %vm93_vm13  ;;  %v1323_v33 = vsub.f32 %v127_v30, %v127_v30  ;;  %v126_v34 = vsel %vm1298_vm3, 1.0, %v2003_v16  ;;  %vm89_vm12 = vcmp.lt.s32.totalorder %v53_v19, %v1215_v11  ;;  %997 = vmatpush.msk.msra.mxu3 %vm1259_vm0, %v1170_v14 }
  0x18   :  { %v164_v35 = vsub.f32 %v1263_v22, %v1292_v27  ;;  %v1335_v36 = vand.u32 4294901760, %v1302_v29  ;;  %vm1341_vm5 = vmand %vm75_vm6, %vm92_vm14  ;;  %v1345_v38 = vsub.f32 %v126_v34, %v126_v34  ;;  %v125_v39 = vsel %vm1319_vm4, 1.0, %v2003_v16  ;;  %250 = vmatpush.msra.mxu2 %v1281_v25 }
  0x19   :  { %v2040_v37 = vsel %vm1341_vm5, 4294967295, %v2039_v37  ;;  %982 = vmatpush.msk.msra.mxu0 %vm1277_vm2, %v1170_v14  ;;  %v169_v40 = vsub.f32 %v1281_v25, %v1313_v31  ;;  %v1357_v41 = vand.u32 4294901760, %v1323_v33  ;;  %vm1363_vm6 = vmand %vm74_vm1, %vm91_vm7  ;;  %v1367_v43 = vsub.f32 %v125_v39, %v125_v39  ;;  %998 = vmatpush.msk.msra.mxu3 %vm1277_vm2, %v1170_v14 }
  0x1a   :  { %v2042_v42 = vsel %vm1363_vm6, 4294967295, %v2041_v42  ;;  %v124_v44 = vsel %vm1341_vm5, 1.0, %v2003_v16  ;;  %v1375_v45 = vand.u32 4294901760, %v164_v35  ;;  %v174_v46 = vsub.f32 %v1302_v29, %v1335_v36  ;;  %252 = vmatpush.msra.mxu2 %v1302_v29  ;;  %vm1399_vm13 = vmand %vm73_vm8, %vm90_vm9 }
  0x1b   :  { %v1380_v47 = vand.u32 4294901760, %v1345_v38  ;;  %v1382_v48 = vsub.f32 %v124_v44, %v124_v44  ;;  %v1385_v49 = vand.u32 4294901760, %v169_v40  ;;  %983 = vmatpush.msk.msra.mxu0 %vm1298_vm3, %v1170_v14  ;;  %v179_v50 = vsub.f32 %v1323_v33, %v1357_v41  ;;  %999 = vmatpush.msk.msra.mxu3 %vm1298_vm3, %v1170_v14  ;;  %vm1421_vm14 = vmand %vm72_vm10, %vm89_vm12 }
  0x1c   :  { %2043 = vst [vmem:[#allocation11_spill] sm:$0xff] %v1375_v45  ;;  %v1393_v51 = vand.u32 4294901760, %v1367_v43  ;;  %v2046_v52 = vsel %vm1399_vm13, 4294967295, %v2045_v52  ;;  %v123_v53 = vsel %vm1363_vm6, 1.0, %v2003_v16  ;;  %166 = vmatpush.msra.mxu1 %v1375_v45  ;;  %v1410_v54 = vand.u32 4294901760, %v174_v46  ;;  %254 = vmatpush.msra.mxu2 %v1323_v33 }
  0x1d   :  { %2044 = vst [vmem:[#allocation12_spill] sm:$0xff] %v1385_v49  ;;  %v184_v55 = vsub.f32 %v1345_v38, %v1380_v47  ;;  %v1415_v56 = vand.u32 4294901760, %v1382_v48  ;;  %v2049_v57 = vsel %vm1421_vm14, 4294967295, %v2048_v57  ;;  %v1425_v58 = vsub.f32 %v123_v53, %v123_v53  ;;  %984 = vmatpush.msk.msra.mxu0 %vm1319_vm4, %v1170_v14  ;;  %1000 = vmatpush.msk.msra.mxu3 %vm1319_vm4, %v1170_v14 }
  0x1e   :  { %2047 = vst [vmem:[#allocation13_spill] sm:$0xff] %v1410_v54  ;;  %vm71_vm1 = vcmp.ge.s32.totalorder %v1250_v20, %v1205_v4  ;;  %vm88_vm7 = vcmp.lt.s32.totalorder %v1250_v20, %v1215_v11  ;;  %171 = vmatpush.msra.mxu1 %v1385_v49  ;;  %v1439_v59 = vand.u32 4294901760, %v179_v50  ;;  %v189_v60 = vsub.f32 %v1367_v43, %v1393_v51 }
  0x1f   :  { %v1444_v61 = vand.u32 4294901760, %v1425_v58  ;;  %vm1446_vm8 = vmand %vm71_vm1, %vm88_vm7  ;;  %v2051_v62 = vmov 0  ;;  %v122_v63 = vsel %vm1399_vm13, 1.0, %v2003_v16  ;;  %256 = vmatpush.msra.mxu2 %v1345_v38  ;;  %985 = vmatpush.msk.msra.mxu0 %vm1341_vm5, %v1170_v14  ;;  %v1457_v0 = vand.u32 4294901760, %v184_v55  ;;  %v1545_v55 = vld [vmem:[#allocation2] sm:$0xf] }
  0x20   :  { %2050 = vst [vmem:[#allocation14_spill] sm:$0xff] %v1439_v59  ;;  %v2052_v62 = vsel %vm1446_vm8, 4294967295, %v2051_v62  ;;  %v1459_v3 = vsub.f32 %v122_v63, %v122_v63  ;;  %v51_v5 = vadd.s32 32, %v1199_v1  ;;  %v121_v6 = vsel %vm1421_vm14, 1.0, %v2003_v16  ;;  %1001 = vmatpush.msk.msra.mxu3 %vm1341_vm5, %v1170_v14  ;;  %176 = vmatpush.msra.mxu1 %v1410_v54 }
  0x21   :  { %2053 = vst [vmem:[#allocation15_spill] sm:$0xff] %v1457_v0  ;;  %v194_v7 = vsub.f32 %v1382_v48, %v1415_v56  ;;  %v199_v8 = vsub.f32 %v1425_v58, %v1444_v61  ;;  %v1473_v9 = vsub.f32 %v121_v6, %v121_v6  ;;  %v50_v10 = vadd.s32 24, %v1199_v1  ;;  %258 = vmatpush.msra.mxu2 %v1367_v43 }
  0x22   :  { %986 = vmatpush.msk.msra.mxu0 %vm1363_vm6, %v1170_v14  ;;  %v1481_v13 = vand.u32 4294901760, %v1459_v3  ;;  %vm70_vm9 = vcmp.ge.s32.totalorder %v51_v5, %v1205_v4  ;;  %vm87_vm10 = vcmp.lt.s32.totalorder %v51_v5, %v1215_v11  ;;  %v120_v17 = vsel %vm1446_vm8, 1.0, %v2003_v16  ;;  %1002 = vmatpush.msk.msra.mxu3 %vm1363_vm6, %v1170_v14  ;;  %2061 = vst [vmem:[#allocation19_spill] sm:$0xff] %v1545_v55 }
  0x23   :  { %181 = vmatpush.msra.mxu1 %v1439_v59  ;;  %v1492_v18 = vand.u32 4294901760, %v189_v60  ;;  %vm1494_vm12 = vmand %vm70_vm9, %vm87_vm10  ;;  %v2055_v19 = vmov 0  ;;  %v1499_v20 = vand.u32 4294901760, %v1473_v9  ;;  %vm69_vm1 = vcmp.ge.s32.totalorder %v50_v10, %v1205_v4  ;;  %260 = vmatpush.msra.mxu2 %v1382_v48 }
  0x24   :  { %v2056_v19 = vsel %vm1494_vm12, 4294967295, %v2055_v19  ;;  %vm86_vm7 = vcmp.lt.s32.totalorder %v50_v10, %v1215_v11  ;;  %987 = vmatpush.msk.msra.mxu0 %vm1399_vm13, %v1170_v14  ;;  %v204_v23 = vsub.f32 %v1459_v3, %v1481_v13  ;;  %v2057_v26 = vmov 0  ;;  %1003 = vmatpush.msk.msra.mxu3 %vm1399_vm13, %v1170_v14 }
  0x25   :  { %2054 = vst [vmem:[#allocation16_spill] sm:$0xff] %v1492_v18  ;;  %vm1509_vm9 = vmand %vm69_vm1, %vm86_vm7  ;;  %v1513_v30 = vsub.f32 %v120_v17, %v120_v17  ;;  %v49_v34 = vadd.s32 16, %v1199_v1  ;;  %v119_v35 = vsel %vm1494_vm12, 1.0, %v2003_v16  ;;  %186 = vmatpush.msra.mxu1 %v1457_v0  ;;  %v1523_v39 = vand.u32 4294901760, %v194_v7  ;;  %262 = vmatpush.msra.mxu2 %v1425_v58 }
  0x26   :  { %v2058_v26 = vsel %vm1509_vm9, 4294967295, %v2057_v26  ;;  %v1525_v40 = vsub.f32 %v119_v35, %v119_v35  ;;  %v48_v44 = vadd.s32 8, %v1199_v1  ;;  %v118_v46 = vsel %vm1509_vm9, 1.0, %v2003_v16  ;;  %988 = vmatpush.msk.msra.mxu0 %vm1421_vm14, %v1170_v14  ;;  %1004 = vmatpush.msk.msra.mxu3 %vm1421_vm14, %v1170_v14 }
  0x27   :  { %2059 = vst [vmem:[#allocation17_spill] sm:$0xff] %v1523_v39  ;;  %v1535_v50 = vand.u32 4294901760, %v199_v8  ;;  %v1538_v53 = vand.u32 4294901760, %v1513_v30  ;;  %vm68_vm10 = vcmp.ge.s32.totalorder %v49_v34, %v1205_v4  ;;  %vm85_vm1 = vcmp.lt.s32.totalorder %v49_v34, %v1215_v11  ;;  %191 = vmatpush.msra.mxu1 %v1492_v18  ;;  %264 = vmatpush.msra.mxu2 %v1459_v3 }
  0x28   :  { %v209_v60 = vsub.f32 %v1473_v9, %v1499_v20  ;;  %vm1550_vm7 = vmand %vm68_vm10, %vm85_vm1  ;;  %v2062_v63 = vmov 0  ;;  %v1555_v5 = vand.u32 4294901760, %v1525_v40  ;;  %vm67_vm13 = vcmp.ge.s32.totalorder %v48_v44, %v1205_v4  ;;  %989 = vmatpush.msk.msra.mxu0 %vm1446_vm8, %v1170_v14  ;;  %1005 = vmatpush.msk.msra.mxu3 %vm1446_vm8, %v1170_v14 }
  0x29   :  { %2060 = vst [vmem:[#allocation18_spill] sm:$0xff] %v1535_v50  ;;  %v2063_v63 = vsel %vm1550_vm7, 4294967295, %v2062_v63  ;;  %vm84_vm6 = vcmp.lt.s32.totalorder %v48_v44, %v1215_v11  ;;  %v1563_v6 = vand.u32 4294901760, %v204_v23  ;;  %v1569_v8 = vsub.f32 %v118_v46, %v118_v46  ;;  %196 = vmatpush.msra.mxu1 %v1523_v39  ;;  %266 = vmatpush.msra.mxu2 %v1473_v9 }
  0x2a   :  { %vm1565_vm14 = vmand %vm67_vm13, %vm84_vm6  ;;  %vm66_vm10 = vcmp.ge.s32.totalorder %v1199_v1, %v1205_v4  ;;  %vm83_vm1 = vcmp.lt.s32.totalorder %v1199_v1, %v1215_v11  ;;  %v214_v10 = vsub.f32 %v1513_v30, %v1538_v53  ;;  %v117_v23 = vsel %vm1550_vm7, 1.0, %v2003_v16  ;;  %990 = vmatpush.msk.msra.mxu0 %vm1494_vm12, %v1170_v14  ;;  %1006 = vmatpush.msk.msra.mxu3 %vm1494_vm12, %v1170_v14 }
  0x2b   :  { %2064 = vst [vmem:[#allocation20_spill] sm:$0xff] %v1563_v6  ;;  %vm1578_vm5 = vmand %vm66_vm10, %vm83_vm1  ;;  %v116_v4 = vsel %vm1565_vm14, 1.0, %v2003_v16  ;;  %v1590_v11 = vand.u32 4294901760, %v1545_v55  ;;  %v1596_v34 = vand.u32 4294901760, %v1569_v8  ;;  %v1598_v35 = vsub.f32 %v117_v23, %v117_v23  ;;  %201 = vmatpush.msra.mxu1 %v1535_v50  ;;  %268 = vmatpush.msra.mxu2 %v1513_v30 }
  0x2c   :  { %v1600_v44 = vsub.f32 %v116_v4, %v116_v4  ;;  %v1606_v46 = vand.u32 4294901760, %v209_v60  ;;  %v219_v16 = vsub.f32 %v1525_v40, %v1555_v5  ;;  %v2070_v39 = vmov 0.0   ;;  %991 = vmatpush.msk.msra.mxu0 %vm1509_vm9, %v1170_v14  ;;  %1007 = vmatpush.msk.msra.mxu3 %vm1509_vm9, %v1170_v14 }
  0x2d   :  { %v115_v18 = vsel %vm1578_vm5, 1.0, %v2070_v39  ;;  %v154_v23 = vsub.f32 %v1545_v55, %v1590_v11  ;;  %v1620_v4 = vand.u32 4294901760, %v1598_v35  ;;  %206 = vmatpush.msra.mxu1 %v1563_v6  ;;  %v1628_v50 = vand.u32 4294901760, %v214_v10  ;;  %270 = vmatpush.msra.mxu2 %v1525_v40 }
  0x2e   :  { %2069 = vst [vmem:[#allocation21_spill] sm:$0xff] %v1606_v46  ;;  %v1622_v60 = vsub.f32 %v115_v18, %v115_v18  ;;  %v224_v55 = vsub.f32 %v1569_v8, %v1596_v34  ;;  %v1633_v0 = vand.u32 4294901760, %v1600_v44  ;;  %992 = vmatpush.msk.msra.mxu0 %vm1550_vm7, %v1170_v14  ;;  %v1643_v18 = vand.u32 4294901760, %v219_v16  ;;  %1008 = vmatpush.msk.msra.mxu3 %vm1550_vm7, %v1170_v14 }
  0x2f   :  { %2071 = vst [vmem:[#allocation22_spill] sm:$0xff] %v1628_v50  ;;  %v155_v59 = vand.u32 4294901760, %v154_v23  ;;  %211 = vmatpush.msra.mxu1 %v1606_v46  ;;  %v229_v10 = vsub.f32 %v1598_v35, %v1620_v4  ;;  %272 = vmatpush.msra.mxu2 %v1569_v8  ;;  %vm2072_vm6 = vnez %v2040_v37  ;;  %vm2073_vm13 = vnez %v2042_v42 }
  0x30   :  { %v1648_v6 = vand.u32 4294901760, %v1622_v60  ;;  %993 = vmatpush.msk.msra.mxu0 %vm1565_vm14, %v1170_v14  ;;  %v1658_v16 = vand.u32 4294901760, %v224_v55  ;;  %v234_v46 = vsub.f32 %v1600_v44, %v1633_v0  ;;  %1009 = vmatpush.msk.msra.mxu3 %vm1565_vm14, %v1170_v14  ;;  %vm2074_vm10 = vnez %v2046_v52 }
  0x31   :  { %v156_v54 = vsub.f32 %v154_v23, %v155_v59  ;;  %216 = vmatpush.msra.mxu1 %v1628_v50  ;;  %274 = vmatpush.msra.mxu2 %v1598_v35  ;;  %v1670_v45 = vand.u32 4294901760, %v229_v10  ;;  %vm2075_vm1 = vnez %v2049_v57 }
  0x32   :  { %994 = vmatpush.msk.msra.mxu0 %vm1578_vm5, %v1170_v14  ;;  %v239_v55 = vsub.f32 %v1622_v60, %v1648_v6  ;;  %1010 = vmatpush.msk.msra.mxu3 %vm1578_vm5, %v1170_v14  ;;  %v1680_v50 = vand.u32 4294901760, %v234_v46 }
  0x33   :  { %v157_v49 = vand.u32 4294901760, %v156_v54  ;;  %221 = vmatpush.msra.mxu1 %v1643_v18  ;;  %276 = vmatpush.msra.mxu2 %v1600_v44 }
  0x34   :  { %310 = vmatpush.msrb.mxu0 %v1292_v27  ;;  %v1685_v54 = vand.u32 4294901760, %v239_v55  ;;  %304 = vmatmul.f32.vlgmr.msra.gmra.mxu3 %v155_v59 }
  0x35   :  { %226 = vmatpush.msra.mxu1 %v1658_v16  ;;  %278 = vmatpush.msra.mxu2 %v1622_v60 }
  0x36   :  { %313 = vmatpush.msrb.mxu0 %v1313_v31  ;;  %281 = vmatmul.f32.vlgmr.msra.gmra.mxu2 %v154_v23 }
  0x37   :  { %158 = vmatmul.f32.vlgmr.msra.gmra.mxu0 %v157_v49  ;;  %231 = vmatpush.msra.mxu1 %v1670_v45 }
  0x38   :  { %316 = vmatpush.msrb.mxu0 %v1335_v36 }
  0x39   :  { %236 = vmatpush.msra.mxu1 %v1680_v50 }
  0x3a   :  { %319 = vmatpush.msrb.mxu0 %v1357_v41 }
  0x3b   :  { %241 = vmatpush.msra.mxu1 %v1685_v54 }
  0x3c   :  { %322 = vmatpush.msrb.mxu0 %v1380_v47  ;;  %243 = vmatmul.f32.vlgmr.msra.gmra.mxu1 %v1590_v11 }
  0x3d   :  { %1011 = vmatpush.msk.msrb.mxu1 %vm1227_vm11, %v1170_v14 }
  0x3e   :  { %325 = vmatpush.msrb.mxu0 %v1393_v51 }
  0x3f   :  { %1012 = vmatpush.msk.msrb.mxu1 %vm1240_vm15, %v1170_v14 }
  0x40   :  { %328 = vmatpush.msrb.mxu0 %v1415_v56 }
  0x41   :  { %1013 = vmatpush.msk.msrb.mxu1 %vm1259_vm0, %v1170_v14 }
  0x42   :  { %331 = vmatpush.msrb.mxu0 %v1444_v61 }
  0x43   :  { %1014 = vmatpush.msk.msrb.mxu1 %vm1277_vm2, %v1170_v14 }
  0x44   :  { %334 = vmatpush.msrb.mxu0 %v1481_v13 }
  0x45   :  { %1015 = vmatpush.msk.msrb.mxu1 %vm1298_vm3, %v1170_v14 }
  0x46   :  { %337 = vmatpush.msrb.mxu0 %v1499_v20 }
  0x47   :  { %1016 = vmatpush.msk.msrb.mxu1 %vm1319_vm4, %v1170_v14 }
  0x48   :  { %340 = vmatpush.msrb.mxu0 %v1538_v53 }
  0x49   :  { %1017 = vmatpush.msk.msrb.mxu1 %vm2072_vm6, %v1170_v14 }
  0x4a   :  { %343 = vmatpush.msrb.mxu0 %v1555_v5 }
  0x4b   :  { %1018 = vmatpush.msk.msrb.mxu1 %vm2073_vm13, %v1170_v14 }
  0x4c   :  { %346 = vmatpush.msrb.mxu0 %v1596_v34 }
  0x4d   :  { %1019 = vmatpush.msk.msrb.mxu1 %vm2074_vm10, %v1170_v14 }
  0x4e   :  { %349 = vmatpush.msrb.mxu0 %v1620_v4 }
  0x4f   :  { %1020 = vmatpush.msk.msrb.mxu1 %vm2075_vm1, %v1170_v14 }
  0x50   :  { %352 = vmatpush.msrb.mxu0 %v1633_v0 }
  0x51   :  { %1021 = vmatpush.msk.msrb.mxu1 %vm1446_vm8, %v1170_v14 }
  0x52   :  { %355 = vmatpush.msrb.mxu0 %v1648_v6 }
  0x53   :  { %1022 = vmatpush.msk.msrb.mxu1 %vm1494_vm12, %v1170_v14  ;;  %357 = vmatmul.f32.vlgmr.msrb.gmra.mxu0 %v1590_v11 }
  0x54   :  { %650 = vmatpush.msra.mxu0 %v1263_v22  ;;  %v131_v22 = vmul.u32 32, %v1199_v1 }
  0x55   :  { %1023 = vmatpush.msk.msrb.mxu1 %vm1509_vm9, %v1170_v14 }
  0x56   :  { %652 = vmatpush.msra.mxu0 %v1281_v25  ;;  %v133_v25 = vadd.s32 32, %v131_v22 }
  0x57   :  { %1024 = vmatpush.msk.msrb.mxu1 %vm1550_vm7, %v1170_v14 }
  0x58   :  { %654 = vmatpush.msra.mxu0 %v1302_v29 }
  0x59   :  { %1025 = vmatpush.msk.msrb.mxu1 %vm1565_vm14, %v1170_v14 }
  0x5a   :  { %656 = vmatpush.msra.mxu0 %v1323_v33 }
  0x5b   :  { %1026 = vmatpush.msk.msrb.mxu1 %vm1578_vm5, %v1170_v14 }
  0x5c   :  { %378 = vmatmul.f32.vlgmr.msrb.gmra.mxu1 %v1590_v11  ;;  %658 = vmatpush.msra.mxu0 %v1345_v38 }
  0x5d   :  { %1046 = vmatpush.msk.msra.mxu1 %vm1227_vm11, %v1170_v14 }
  0x5e   :  { %660 = vmatpush.msra.mxu0 %v1367_v43 }
  0x5f   :  { %1047 = vmatpush.msk.msra.mxu1 %vm1240_vm15, %v1170_v14 }
  0x60   :  { %662 = vmatpush.msra.mxu0 %v1382_v48 }
  0x61   :  { %1048 = vmatpush.msk.msra.mxu1 %vm1259_vm0, %v1170_v14 }
  0x62   :  { %664 = vmatpush.msra.mxu0 %v1425_v58 }
  0x63   :  { %1049 = vmatpush.msk.msra.mxu1 %vm1277_vm2, %v1170_v14 }
  0x64   :  { %666 = vmatpush.msra.mxu0 %v1459_v3 }
  0x65   :  { %1050 = vmatpush.msk.msra.mxu1 %vm1298_vm3, %v1170_v14 }
  0x66   :  { %668 = vmatpush.msra.mxu0 %v1473_v9 }
  0x67   :  { %1051 = vmatpush.msk.msra.mxu1 %vm1319_vm4, %v1170_v14 }
  0x68   :  { %670 = vmatpush.msra.mxu0 %v1513_v30 }
  0x69   :  { %1052 = vmatpush.msk.msra.mxu1 %vm2072_vm6, %v1170_v14 }
  0x6a   :  { %672 = vmatpush.msra.mxu0 %v1525_v40 }
  0x6b   :  { %1053 = vmatpush.msk.msra.mxu1 %vm2073_vm13, %v1170_v14 }
  0x6c   :  { %674 = vmatpush.msra.mxu0 %v1569_v8 }
  0x6d   :  { %1054 = vmatpush.msk.msra.mxu1 %vm2074_vm10, %v1170_v14 }
  0x6e   :  { %676 = vmatpush.msra.mxu0 %v1598_v35 }
  0x6f   :  { %1055 = vmatpush.msk.msra.mxu1 %vm2075_vm1, %v1170_v14 }
  0x70   :  { %678 = vmatpush.msra.mxu0 %v1600_v44 }
  0x71   :  { %1056 = vmatpush.msk.msra.mxu1 %vm1446_vm8, %v1170_v14  ;;  %vm134_vm8 = vcmp.lt.s32.totalorder %v1201_v2, %v133_v25  ;;  %v2077_v25 = vld [vmem:[#allocation12_spill] sm:$0xff] }
  0x72   :  { %680 = vmatpush.msra.mxu0 %v1622_v60 }
  0x73   :  { %1057 = vmatpush.msk.msra.mxu1 %vm1494_vm12, %v1170_v14  ;;  %vm132_vm12 = vcmp.ge.s32.totalorder %v1201_v2, %v131_v22  ;;  %v2076_v22 = vld [vmem:[#allocation11_spill] sm:$0xff] }
  0x75   :  { %1058 = vmatpush.msk.msra.mxu1 %vm1509_vm9, %v1170_v14  ;;  %vm135_vm9 = vmand %vm132_vm12, %vm134_vm8  ;;  %vm2025_vm8 = vcmask 31744   ;;  %vm2087_vm12 = vnez %v2052_v62 }
  0x76   :  { %v1822_v29 = vsel %vm135_vm9, 1.0, %v2070_v39  ;;  %vm2088_vm9 = vnez %v2056_v19 }
  0x77   :  { %1059 = vmatpush.msk.msra.mxu1 %vm1550_vm7, %v1170_v14  ;;  %vm2026_vm7 = vcmask 1043456  }
  0x78   :  { %v389_v33 = vsel %vm2026_vm7, %v1822_v29, 0  ;;  %1027 = vmatpush.msk.msrb.mxu2 %vm2026_vm7, %v1822_v29  ;;  %1078 = vmatpush.msk.msrb.mxu0 %vm2026_vm7, %v1822_v29 }
  0x79   :  { %1060 = vmatpush.msk.msra.mxu1 %vm1565_vm14, %v1170_v14  ;;  %v1830_v1 = vsub.f32 %v389_v33, %v389_v33  ;;  %v2078_v33 = vld [vmem:[#allocation13_spill] sm:$0xff] }
  0x7b   :  { %1061 = vmatpush.msk.msra.mxu1 %vm1578_vm5, %v1170_v14  ;;  %v1833_v38 = vand.u32 4294901760, %v1830_v1  ;;  %460 = vmatpush.msra.mxu2 %v1830_v1 }
  0x7d   :  { %v435_v2 = vsub.f32 %v1830_v1, %v1833_v38 }
  0x7f   :  { %v436_v43 = vand.u32 4294901760, %v435_v2  ;;  %v2079_v2 = vld [vmem:[#allocation14_spill] sm:$0xff] }
  0x81   :  { %437 = vmatpush.msrb.mxu3 %v436_v43  ;;  %851 = vmatpush.msrb.mxu1 %v436_v43  ;;  %v2080_v43 = vld [vmem:[#allocation15_spill] sm:$0xff] }
  0x83   :  { %1028 = vmatpush.msk.msra.mxu3 %vm2026_vm7, %v1822_v29 }
  0xb4   :  { %v159_v49 = vpop.f32.mrf.mxu0 }
  0xb7   :  { %v305_v9 = vpop.f32.mrf.mxu3 }
  0xb9   :  { %v244_v48 = vpop.f32.mrf.mxu1  ;;  %v282_v59 = vpop.f32.mrf.mxu2 }
  0xba   :  { %v245_v58 = vadd.f32 %v244_v48, %v159_v49  ;;  %v2081_v48 = vld [vmem:[#allocation16_spill] sm:$0xff]  ;;  %v2082_v49 = vld [vmem:[#allocation17_spill] sm:$0xff] }
  0xbc   :  { %v283_v3 = vadd.f32 %v282_v59, %v245_v58  ;;  %v2083_v58 = vld [vmem:[#allocation18_spill] sm:$0xff]  ;;  %v2084_v59 = vld [vmem:[#allocation20_spill] sm:$0xff] }
  0xbe   :  { %v306_v30 = vadd.f32 %v305_v9, %v283_v3  ;;  %v2085_v3 = vld [vmem:[#allocation21_spill] sm:$0xff]  ;;  %v2086_v9 = vld [vmem:[#allocation22_spill] sm:$0xff] }
  0xd0   :  { %v358_v39 = vpop.f32.mrf.mxu0 }
  0xd1   :  { %v359_v40 = vadd.f32 %v358_v39, %v306_v30 }
  0xd9   :  { %v379_v8 = vpop.f32.mrf.mxu1 }
  0xda   :  { %v380_v11 = vadd.f32 %v379_v8, %v359_v40 }
  0xdc   :  { %v382_v35 = vmul.f32 0.03125, %v380_v11 }
  0xde   :  { %v385_v44 = vsel %vm2025_vm8, %v382_v35, 0  ;;  %vm2089_vm8 = vnez %v2058_v26 }
  0xdf   :  { %v408_v46 = vand.u32 4294901760, %v385_v44 }
  0xe1   :  { %v409_v23 = vsub.f32 %v385_v44, %v408_v46  ;;  %439 = vmatmul.f32.vlgmr.msrb.gmra.mxu3 %v408_v46 }
  0xe2   :  { %1029 = vmatpush.msk.msrb.mxu3 %vm2026_vm7, %v1822_v29  ;;  %vm2090_vm7 = vnez %v2063_v63 }
  0xe3   :  { %v410_v60 = vand.u32 4294901760, %v409_v23 }
  0xe5   :  { %v411_v10 = vsub.f32 %v409_v23, %v410_v60 }
  0xe7   :  { %v412_v55 = vand.u32 4294901760, %v411_v10 }
  0xe9   :  { %413 = vmatmul.f32.vlgmr.msrb.gmra.mxu2 %v412_v55  ;;  %487 = vmatmul.f32.vlgmr.msra.gmra.mxu3 %v410_v60 }
  0xea   :  { %509 = vmatpush.msrb.mxu2 %v1833_v38  ;;  %568 = vmatpush.msra.mxu3 %v2076_v22 }
  0xec   :  { %573 = vmatpush.msra.mxu3 %v2077_v25 }
  0xee   :  { %578 = vmatpush.msra.mxu3 %v2078_v33 }
  0xf0   :  { %583 = vmatpush.msra.mxu3 %v2079_v2 }
  0xf1   :  { %463 = vmatmul.f32.vlgmr.msra.gmra.mxu2 %v409_v23  ;;  %533 = vmatmul.f32.vlgmr.msrb.gmra.mxu3 %v408_v46 }
  0xf2   :  { %1030 = vmatpush.msk.msra.mxu2 %vm1227_vm11, %v1170_v14  ;;  %588 = vmatpush.msra.mxu3 %v2080_v43 }
  0xf4   :  { %1031 = vmatpush.msk.msra.mxu2 %vm1240_vm15, %v1170_v14  ;;  %593 = vmatpush.msra.mxu3 %v2081_v48 }
  0xf6   :  { %1032 = vmatpush.msk.msra.mxu2 %vm1259_vm0, %v1170_v14  ;;  %598 = vmatpush.msra.mxu3 %v2082_v49 }
  0xf8   :  { %1033 = vmatpush.msk.msra.mxu2 %vm1277_vm2, %v1170_v14  ;;  %603 = vmatpush.msra.mxu3 %v2083_v58 }
  0xf9   :  { %511 = vmatmul.f32.vlgmr.msrb.gmra.mxu2 %v408_v46 }
  0xfa   :  { %1034 = vmatpush.msk.msra.mxu2 %vm1298_vm3, %v1170_v14  ;;  %608 = vmatpush.msra.mxu3 %v2084_v59  ;;  %v1086_v59 = vld [vmem:[#allocation5] ss:$0 sm:$0xff] }
  0xfc   :  { %1035 = vmatpush.msk.msra.mxu2 %vm1319_vm4, %v1170_v14  ;;  %613 = vmatpush.msra.mxu3 %v2085_v3 }
  0xfe   :  { %1036 = vmatpush.msk.msra.mxu2 %vm2072_vm6, %v1170_v14  ;;  %618 = vmatpush.msra.mxu3 %v2086_v9 }
 0x100   :  { %1037 = vmatpush.msk.msra.mxu2 %vm2073_vm13, %v1170_v14  ;;  %623 = vmatpush.msra.mxu3 %v1643_v18 }
 0x102   :  { %1038 = vmatpush.msk.msra.mxu2 %vm2074_vm10, %v1170_v14  ;;  %628 = vmatpush.msra.mxu3 %v1658_v16 }
 0x104   :  { %1039 = vmatpush.msk.msra.mxu2 %vm2075_vm1, %v1170_v14  ;;  %633 = vmatpush.msra.mxu3 %v1670_v45 }
 0x106   :  { %1040 = vmatpush.msk.msra.mxu2 %vm2087_vm12, %v1170_v14  ;;  %638 = vmatpush.msra.mxu3 %v1680_v50 }
 0x108   :  { %1041 = vmatpush.msk.msra.mxu2 %vm2088_vm9, %v1170_v14  ;;  %643 = vmatpush.msra.mxu3 %v1685_v54 }
 0x10a   :  { %1062 = vmatpush.msk.msrb.mxu3 %vm1227_vm11, %v1170_v14  ;;  %1042 = vmatpush.msk.msra.mxu2 %vm2089_vm8, %v1170_v14  ;;  %vm2092_vm11 = vcmask 1043456  }
 0x10c   :  { %1063 = vmatpush.msk.msrb.mxu3 %vm1240_vm15, %v1170_v14  ;;  %1043 = vmatpush.msk.msra.mxu2 %vm2090_vm7, %v1170_v14 }
 0x10e   :  { %1064 = vmatpush.msk.msrb.mxu3 %vm1259_vm0, %v1170_v14  ;;  %1044 = vmatpush.msk.msra.mxu2 %vm1565_vm14, %v1170_v14 }
 0x110   :  { %1065 = vmatpush.msk.msrb.mxu3 %vm1277_vm2, %v1170_v14  ;;  %1045 = vmatpush.msk.msra.mxu2 %vm1578_vm5, %v1170_v14 }
 0x112   :  { %712 = vmatpush.msrb.mxu2 %v1292_v27  ;;  %1066 = vmatpush.msk.msrb.mxu3 %vm1298_vm3, %v1170_v14 }
 0x114   :  { %715 = vmatpush.msrb.mxu2 %v1313_v31  ;;  %1067 = vmatpush.msk.msrb.mxu3 %vm1319_vm4, %v1170_v14  ;;  %vm2093_vm4 = vcmask 31744  }
 0x116   :  { %718 = vmatpush.msrb.mxu2 %v1335_v36  ;;  %1068 = vmatpush.msk.msrb.mxu3 %vm2072_vm6, %v1170_v14 }
 0x118   :  { %721 = vmatpush.msrb.mxu2 %v1357_v41  ;;  %1069 = vmatpush.msk.msrb.mxu3 %vm2073_vm13, %v1170_v14 }
 0x11a   :  { %724 = vmatpush.msrb.mxu2 %v1380_v47  ;;  %1070 = vmatpush.msk.msrb.mxu3 %vm2074_vm10, %v1170_v14 }
 0x11c   :  { %727 = vmatpush.msrb.mxu2 %v1393_v51  ;;  %1071 = vmatpush.msk.msrb.mxu3 %vm2075_vm1, %v1170_v14 }
 0x11e   :  { %730 = vmatpush.msrb.mxu2 %v1415_v56  ;;  %1072 = vmatpush.msk.msrb.mxu3 %vm2087_vm12, %v1170_v14 }
 0x120   :  { %733 = vmatpush.msrb.mxu2 %v1444_v61  ;;  %1073 = vmatpush.msk.msrb.mxu3 %vm2088_vm9, %v1170_v14 }
 0x122   :  { %736 = vmatpush.msrb.mxu2 %v1481_v13  ;;  %1074 = vmatpush.msk.msrb.mxu3 %vm2089_vm8, %v1170_v14 }
 0x124   :  { %739 = vmatpush.msrb.mxu2 %v1499_v20  ;;  %1075 = vmatpush.msk.msrb.mxu3 %vm2090_vm7, %v1170_v14 }
 0x126   :  { %742 = vmatpush.msrb.mxu2 %v1538_v53  ;;  %1076 = vmatpush.msk.msrb.mxu3 %vm1565_vm14, %v1170_v14 }
 0x128   :  { %745 = vmatpush.msrb.mxu2 %v1555_v5  ;;  %1077 = vmatpush.msk.msrb.mxu3 %vm1578_vm5, %v1170_v14  ;;  %v2091_v14 = vld [vmem:[#allocation19_spill] sm:$0xff]  ;;  %vm2094_vm5 = vmmov %vm2092_vm11 }
 0x12a   :  { %748 = vmatpush.msrb.mxu2 %v1596_v34 }
 0x12c   :  { %751 = vmatpush.msrb.mxu2 %v1620_v4 }
 0x12e   :  { %754 = vmatpush.msrb.mxu2 %v1633_v0 }
 0x130   :  { %757 = vmatpush.msrb.mxu2 %v1648_v6 }
 0x164   :  { %v440_v12 = vpop.f32.mrf.mxu3 }
 0x16c   :  { %v414_v15 = vpop.f32.mrf.mxu2  ;;  %v488_v21 = vpop.f32.mrf.mxu3 }
 0x16d   :  { %v441_v27 = vadd.f32 %v440_v12, %v414_v15 }
 0x174   :  { %v464_v24 = vpop.f32.mrf.mxu2  ;;  %v534_v37 = vpop.f32.mrf.mxu3 }
 0x175   :  { %v465_v28 = vadd.f32 %v464_v24, %v441_v27 }
 0x177   :  { %v489_v31 = vadd.f32 %v488_v21, %v465_v28 }
 0x17c   :  { %v512_v32 = vpop.f32.mrf.mxu2 }
 0x17d   :  { %v513_v36 = vadd.f32 %v512_v32, %v489_v31 }
 0x17f   :  { %v535_v41 = vadd.f32 %v534_v37, %v513_v36 }
 0x181   :  { %v1973_v42 = vsub.f32 %v2091_v14, %v535_v41 }
 0x183   :  { %v538_v45 = vmul.f32 %v1973_v42, %v1973_v42 }
 0x185   :  { %v555_v47 = vand.u32 4294901760, %v538_v45 }
 0x187   :  { %645 = vmatmul.f32.vlgmr.msra.gmra.mxu3 %v555_v47  ;;  %v556_v51 = vsub.f32 %v538_v45, %v555_v47 }
 0x189   :  { %683 = vmatmul.f32.vlgmr.msra.gmra.mxu0 %v556_v51  ;;  %v557_v52 = vand.u32 4294901760, %v556_v51 }
 0x18a   :  { %874 = vmatpush.msra.mxu0 %v1830_v1 }
 0x18b   :  { %706 = vmatmul.f32.vlgmr.msra.gmra.mxu1 %v557_v52  ;;  %v558_v56 = vsub.f32 %v556_v51, %v557_v52 }
 0x18c   :  { %1079 = vmatpush.msk.msra.mxu1 %vm2092_vm11, %v1822_v29 }
 0x18d   :  { %v559_v57 = vand.u32 4294901760, %v558_v56 }
 0x18f   :  { %560 = vmatmul.f32.vlgmr.msra.gmra.mxu2 %v559_v57  ;;  %780 = vmatmul.f32.vlgmr.msrb.gmra.mxu3 %v555_v47 }
 0x197   :  { %759 = vmatmul.f32.vlgmr.msrb.gmra.mxu2 %v555_v47 }
 0x206   :  { %v684_v13 = vpop.f32.mrf.mxu0 }
 0x208   :  { %v707_v20 = vpop.f32.mrf.mxu1 }
 0x20a   :  { %v646_v61 = vpop.f32.mrf.mxu3 }
 0x212   :  { %v561_v62 = vpop.f32.mrf.mxu2  ;;  %v781_v63 = vpop.f32.mrf.mxu3 }
 0x213   :  { %v647_v0 = vadd.f32 %v646_v61, %v561_v62 }
 0x215   :  { %v685_v19 = vadd.f32 %v684_v13, %v647_v0 }
 0x217   :  { %v708_v26 = vadd.f32 %v707_v20, %v685_v19 }
 0x21a   :  { %v760_v50 = vpop.f32.mrf.mxu2 }
 0x21b   :  { %v761_v53 = vadd.f32 %v760_v50, %v708_v26 }
 0x21d   :  { %v782_v5 = vadd.f32 %v781_v63, %v761_v53 }
 0x21f   :  { %v784_v6 = vmul.f32 0.03125, %v782_v5 }
 0x221   :  { %v785_v7 = vadd.f32 1e-12, %v784_v6 }
 0x223   :  { %v786_v17 = vmul.f32 %v785_v7, %v785_v7 }
 0x225   :  { %1088 = vrcp.f32 %v786_v17  ;;  %v798_v16 = vand.u32 2147483648, %v786_v17  ;;  %v796_v1 = vand.u32 2147483647, %v786_v17  ;;  %vm792_vm0 = vweird.f32 %v786_v17 }
 0x227   :  { %v799_v39 = vor.u32 1.1754944e-38, %v798_v16  ;;  %vm797_vm3 = vcmp.eq.f32.partialorder %v796_v1, 8.507059e+37 }
 0x22b   :  { %v1089_v34 = vpop.eup %1088 }
 0x22c   :  { %v788_v4 = vmul.f32 %v1089_v34, %v786_v17  ;;  %vm793_vm15 = vweird.f32 %v1089_v34 }
 0x22d   :  { %vm794_vm2 = vmor %vm792_vm0, %vm793_vm15 }
 0x22e   :  { %v789_v18 = vsub.f32 1.0, %v788_v4 }
 0x230   :  { %v790_v54 = vmul.f32 %v1089_v34, %v789_v18 }
 0x232   :  { %v791_v30 = vadd.f32 %v1089_v34, %v790_v54 }
 0x234   :  { %v795_v40 = vsel %vm794_vm2, %v1089_v34, %v791_v30 }
 0x235   :  { %v800_v8 = vsel %vm797_vm3, %v799_v39, %v795_v40 }
 0x236   :  { %v803_v11 = vsel %vm2093_vm4, %v800_v8, 0 }
 0x237   :  { %v822_v35 = vand.u32 4294901760, %v803_v11 }
 0x239   :  { %v823_v44 = vsub.f32 %v803_v11, %v822_v35  ;;  %853 = vmatmul.f32.vlgmr.msrb.gmra.mxu1 %v822_v35 }
 0x23a   :  { %1080 = vmatpush.msk.msrb.mxu1 %vm2094_vm5, %v1822_v29 }
 0x23b   :  { %v824_v46 = vand.u32 4294901760, %v823_v44 }
 0x23d   :  { %v825_v23 = vsub.f32 %v823_v44, %v824_v46 }
 0x23f   :  { %v826_v60 = vand.u32 4294901760, %v825_v23 }
 0x241   :  { %827 = vmatmul.f32.vlgmr.msrb.gmra.mxu0 %v826_v60  ;;  %901 = vmatmul.f32.vlgmr.msra.gmra.mxu1 %v824_v46 }
 0x242   :  { %923 = vmatpush.msrb.mxu0 %v1833_v38  ;;  %v1087_v38 = vld [vmem:[%s1993_s2] ss:$0 sm:$0xff] }
 0x249   :  { %877 = vmatmul.f32.vlgmr.msra.gmra.mxu0 %v823_v44  ;;  %947 = vmatmul.f32.vlgmr.msrb.gmra.mxu1 %v822_v35 }
 0x251   :  { %925 = vmatmul.f32.vlgmr.msrb.gmra.mxu0 %v822_v35 }
 0x2b6   :  { %v854_v10 = vpop.f32.mrf.mxu1 }
 0x2be   :  { %v828_v55 = vpop.f32.mrf.mxu0  ;;  %v902_v22 = vpop.f32.mrf.mxu1 }
 0x2bf   :  { %v855_v33 = vadd.f32 %v854_v10, %v828_v55 }
 0x2c6   :  { %v878_v25 = vpop.f32.mrf.mxu0  ;;  %v948_v29 = vpop.f32.mrf.mxu1 }
 0x2c7   :  { %v879_v2 = vadd.f32 %v878_v25, %v855_v33 }
 0x2c9   :  { %v903_v43 = vadd.f32 %v902_v22, %v879_v2 }
 0x2ce   :  { %v926_v48 = vpop.f32.mrf.mxu0 }
 0x2cf   :  { %v927_v49 = vadd.f32 %v926_v48, %v903_v43 }
 0x2d1   :  { %v949_v58 = vadd.f32 %v948_v29, %v927_v49 }
 0x2d3   :  { %v951_v3 = vmul.f32 %v949_v58, %v1973_v42 }
 0x2d5   :  { %v955_v9 = vmul.f32 %v1086_v59, %v951_v3 }
 0x2d7   :  { %v959_v12 = vadd.f32 %v1087_v38, %v955_v9 }
 0x2d9   :  { %960 = vst [vmem:[#allocation7] sm:$0xf] %v959_v12 }
 0x2da   :  { %971 = dma.vmem_to_hbm [thread:$0]  %s967_s23, 64, %s969_s26, [#allocation4]  }
 0x2db   :  { %1166 = dma.done.wait [#allocation4], 64  }
 0x2dc   :  { %1167 = vsyncadd [#allocation4], 4294967232 }
 0x2dd   :  { %976 = vsyncpa [#allocation3], 1 }
 0x2de   :  { %977 = vsyncpa [#allocation6], 1 }
 0x2df   :  { %978 = vsyncpa [#allocation4], 1 }

</bundles_post_ra>
